<compile_context>
chip_gen: v6e
topology: v6e:2x2x1
jax: 0.10.0
libtpu: 0.0.40
codegen_flags: <defaults>
</compile_context>

<pallas_src>
import functools

import jax
import jax.numpy as jnp
from jax import lax
from jax.experimental import pallas as pl
from jax.experimental.pallas import tpu as pltpu


def _bisenet_out_kernel(xc_ref, xup_ref, xdn_ref, wk_ref, b1_ref, wo_ref,
                        out_ref, *, TH, W, Cin, Cmid, CR, stack_k):
    """One grid step = one (batch, H-row-tile) output tile, NCHW-flat layout.

    xc_ref  : (1, Cin, TH*W)   current tile (channels x flattened pixels)
    xup_ref : (1, 1, Cin, W)   image row just above the tile (clamped)
    xdn_ref : (1, 1, Cin, W)   image row just below the tile (clamped)
    wk_ref  : (3, Cmid, 3*Cin) 3x3 conv taps, BN scale folded, dw-stacked on K
    b1_ref  : (Cmid, 1)        fused BN bias (f32)
    wo_ref  : (Ncls, Cmid)     1x1 conv_out weight
    out_ref : (1, Ncls, TH*W)  lane-dense NCHW output tile
    """
    h = pl.program_id(1)
    last_h = pl.num_programs(1) - 1
    M = CR * W

    # Halo rows, zeroed at the image border (the conv's padding=1).
    zero_row = jnp.zeros((Cin, W), xup_ref.dtype)
    top = jnp.where(h > 0, xup_ref[0, 0], zero_row)        # (Cin, W)
    bot = jnp.where(h < last_h, xdn_ref[0, 0], zero_row)   # (Cin, W)

    # (1, M) column-validity masks for the +-1 column taps; identical for every
    # chunk (chunks are whole rows) and broadcast over the Cin sublanes.
    col = lax.broadcasted_iota(jnp.int32, (1, M), 1) % W
    not_first_col = col != 0          # output column c has a left neighbour
    not_last_col = col != (W - 1)     # output column c has a right neighbour

    def dh_slab(r0, dh):
        """Input rows [r0+dh-1, r0+dh-1+CR) of the tile as a (Cin, M) slab."""
        lo = r0 + dh - 1
        if 0 <= lo and lo + CR <= TH:                    # fully inside the tile
            return xc_ref[0, :, lo * W:(lo + CR) * W]    # direct view, no copy
        if lo < 0:                                       # r0 == 0, dh == 0
            if CR == 1:
                return top
            return jnp.concatenate([top, xc_ref[0, :, 0:(CR - 1) * W]], axis=-1)
        # lo + CR == TH + 1  (r0 == TH - CR, dh == 2)
        if CR == 1:
            return bot
        return jnp.concatenate([xc_ref[0, :, lo * W:TH * W], bot], axis=-1)

    for ci in range(TH // CR):
        r0 = ci * CR
        acc = jnp.zeros((Cmid, M), jnp.float32)          # vreg-resident accumulator
        for dh in range(3):
            center = dh_slab(r0, dh)                                      # (Cin, M)
            # Lane-axis shifts of the input realize the +-1 column taps; the
            # row wrap of the flattened pixel axis is masked together with the
            # image border by the column masks.
            left = jnp.where(not_first_col,
                             pltpu.roll(center, shift=1, axis=1), 0.0)
            right = jnp.where(not_last_col,
                              pltpu.roll(center, shift=M - 1, axis=1), 0.0)
            if stack_k:
                # Stack the 3 dw taps along K: one MXU issue per dh.
                stacked = jnp.concatenate([left, center, right], axis=0)
                acc = acc + jnp.dot(wk_ref[dh], stacked,
                                    preferred_element_type=jnp.float32)
            else:
                w0 = wk_ref[dh, :, 0 * Cin:1 * Cin]
                w1 = wk_ref[dh, :, 1 * Cin:2 * Cin]
                w2 = wk_ref[dh, :, 2 * Cin:3 * Cin]
                # Back-to-back dots with no roll/select between their results.
                acc = (acc
                       + jnp.dot(w0, left, preferred_element_type=jnp.float32)
                       + jnp.dot(w1, center, preferred_element_type=jnp.float32)
                       + jnp.dot(w2, right, preferred_element_type=jnp.float32))

        # Fused BN bias + ReLU, then the 1x1 conv_out head.
        feat = jnp.maximum(acc + b1_ref[...], 0.0).astype(wo_ref.dtype)   # (Cmid, M)
        out_t = jnp.dot(wo_ref[...], feat,
                        preferred_element_type=jnp.float32)               # (Ncls, M)
        out_ref[0, :, r0 * W:r0 * W + M] = out_t.astype(out_ref.dtype)


def _pick_chunk_rows(tile_h, W):
    """Rows per inner chunk: keep M = cr*W a multiple of 128 (lane-dense
    stores) and <= ~512 so the (Cmid, M) f32 accumulator stays register-sized."""
    cands = [cr for cr in range(1, tile_h + 1)
             if tile_h % cr == 0 and (cr * W) % 128 == 0]
    if not cands:
        return tile_h
    small = [cr for cr in cands if cr * W <= 512]
    return max(small) if small else min(cands)


def bisenet_output_forward(x_nchw, params, *, tile_h=None,
                           compute_dtype=jnp.bfloat16,
                           out_dtype=jnp.float32):
    """BiSeNetOutput forward.  x_nchw: (B, Cin, H, W) -> (B, n_classes, H, W).

    compute_dtype=bfloat16 (default) runs the MXU at native bf16 rate and
    halves HBM/VMEM traffic (accumulation stays f32); pass float32 for exact
    parity with the f32 reference.  out_dtype=bfloat16 halves the output
    write traffic if downstream tolerates it.
    """
    B, Cin, H, W = x_nchw.shape
    Cmid = params["conv_w"].shape[0]
    Ncls = params["conv_out_w"].shape[0]
    eps = 1e-5

    # ---- fold BN (inference, running stats) into the 3x3 conv; pre-pack ----
    s1 = params["bn_gamma"] * lax.rsqrt(params["bn_var"] + eps)
    b1 = (params["bn_beta"] - params["bn_mean"] * s1).reshape(Cmid, 1)
    b1 = b1.astype(jnp.float32)
    # torch (Cmid, Cin, 3, 3) -> (dh, Cmid, dw, Cin), scale Cmid, merge (dw, Cin)
    wk = jnp.transpose(params["conv_w"], (2, 0, 3, 1)) * s1.reshape(1, Cmid, 1, 1)
    wk = wk.reshape(3, Cmid, 3 * Cin).astype(compute_dtype)
    # torch 1x1 (Ncls, Cmid, 1, 1) -> (Ncls, Cmid)
    wo = params["conv_out_w"][:, :, 0, 0].astype(compute_dtype)

    # NCHW is already the kernel-native layout (channels on sublanes, flat
    # pixels on lanes): the reshape below is metadata-only, no relayout pass.
    x4 = x_nchw.astype(compute_dtype)                    # (B, Cin, H, W)
    x = x4.reshape(B, Cin, H * W)

    # ---- tile_h: largest divisor of H under the per-step VMEM budget -------
    def step_vmem_bytes(th):
        cb = jnp.dtype(compute_dtype).itemsize
        ob = jnp.dtype(out_dtype).itemsize
        xin = th * W * Cin * cb + 2 * W * Cin * cb
        out = Ncls * th * W * ob
        wts = (3 * Cmid * 3 * Cin + Ncls * Cmid) * cb + Cmid * 4
        return 2 * (xin + out + wts)        # double-buffered pipeline stages

    if tile_h is None:
        budget = 40 * 2**20                 # headroom under v7x's 64 MiB VMEM
        divs = [d for d in range(H, 0, -1) if H % d == 0]
        cands = [d for d in divs
                 if ((d * W) % 128 == 0 or d == H) and step_vmem_bytes(d) <= budget]
        if not cands:
            cands = [min(divs, key=step_vmem_bytes)]
        tile_h = cands[0]
        if B == 1:
            # keep >=2 grid steps so both v7x TensorCores get work
            multi = [d for d in cands if H // d >= 2]
            if multi:
                tile_h = multi[0]
    assert H % tile_h == 0, "tile_h must divide H"
    n_h_tiles = H // tile_h
    assert (tile_h * W) % 128 == 0 or n_h_tiles == 1, \
        "tile_h*W must be a multiple of 128 (lane-dense blocks) unless tile_h == H"
    cr = _pick_chunk_rows(tile_h, W)

    # Halo rows, one per tile, gathered by strided slices (reads only the
    # needed rows; tiny compared to x).  Shaped (B, n_h, Cin, W) so the halo
    # BlockSpec's last two dims are full array dims.
    x_up = jnp.moveaxis(x4[:, :, tile_h - 1::tile_h, :], 1, 2)  # last row of each tile
    x_dn = jnp.moveaxis(x4[:, :, ::tile_h, :], 1, 2)            # first row of each tile

    vmem_limit = int(min(max(2 * step_vmem_bytes(tile_h), 32 * 2**20), 64 * 2**20))

    kernel = functools.partial(
        _bisenet_out_kernel, TH=tile_h, W=W, Cin=Cin, Cmid=Cmid, CR=cr,
        stack_k=(Cin % 32 == 0))

    out_flat = pl.pallas_call(
        kernel,
        out_shape=jax.ShapeDtypeStruct((B, Ncls, H * W), out_dtype),
        grid_spec=pltpu.PrefetchScalarGridSpec(
            num_scalar_prefetch=0,
            grid=(B, n_h_tiles),
            in_specs=[
                # current tile (flat pixels on the lane axis)
                pl.BlockSpec((1, Cin, tile_h * W), lambda b, h: (b, 0, h)),
                # 1-row halo above / below: above tile h = last row of tile h-1,
                # below tile h = first row of tile h+1 (clamped; masked in-kernel)
                pl.BlockSpec((1, 1, Cin, W),
                             lambda b, h: (b, jnp.maximum(h - 1, 0), 0, 0)),
                pl.BlockSpec((1, 1, Cin, W),
                             lambda b, h: (b, jnp.minimum(h + 1, n_h_tiles - 1), 0, 0)),
                # grid-invariant weights / bias
                # TODO(synk): pipeline_mode=pl.Buffered(1) on these constant-index
                # specs would halve their VMEM footprint once confirmed supported.
                pl.BlockSpec((3, Cmid, 3 * Cin), lambda b, h: (0, 0, 0)),
                pl.BlockSpec((Cmid, 1), lambda b, h: (0, 0)),
                pl.BlockSpec((Ncls, Cmid), lambda b, h: (0, 0)),
            ],
            out_specs=pl.BlockSpec((1, Ncls, tile_h * W), lambda b, h: (b, 0, h)),
        ),
        compiler_params=pltpu.CompilerParams(
            dimension_semantics=("parallel", "parallel"),
            vmem_limit_bytes=vmem_limit),
    )(x, x_up, x_dn, wk, b1, wo)

    # Metadata-only split of the flat pixel axis back to (H, W) -- no transpose.
    return out_flat.reshape(B, Ncls, H, W)


def reference_forward(x_nchw, params):
    """Pure-JAX reference matching the PyTorch module (BN in eval mode)."""
    eps = 1e-5
    feat = lax.conv_general_dilated(
        x_nchw, params["conv_w"], window_strides=(1, 1),
        padding=((1, 1), (1, 1)),
        dimension_numbers=("NCHW", "OIHW", "NCHW"))
    s1 = params["bn_gamma"] * lax.rsqrt(params["bn_var"] + eps)
    b1 = params["bn_beta"] - params["bn_mean"] * s1
    feat = jnp.maximum(feat * s1.reshape(1, -1, 1, 1)
                       + b1.reshape(1, -1, 1, 1), 0.0)
    return lax.conv_general_dilated(
        feat, params["conv_out_w"], window_strides=(1, 1),
        padding=((0, 0), (0, 0)),
        dimension_numbers=("NCHW", "OIHW", "NCHW"))


def init_params(key, in_chan, mid_chan, n_classes):
    ks = jax.random.split(key, 6)
    return {
        "conv_w": 0.1 * jax.random.normal(
            ks[0], (mid_chan, in_chan, 3, 3), jnp.float32),
        "bn_gamma": jax.random.uniform(ks[1], (mid_chan,), jnp.float32, 0.5, 1.5),
        "bn_beta": 0.1 * jax.random.normal(ks[2], (mid_chan,), jnp.float32),
        "bn_mean": 0.1 * jax.random.normal(ks[3], (mid_chan,), jnp.float32),
        "bn_var": jax.random.uniform(ks[4], (mid_chan,), jnp.float32, 0.5, 1.5),
        "conv_out_w": 0.1 * jax.random.normal(
            ks[5], (n_classes, mid_chan, 1, 1), jnp.float32),
    }


if __name__ == "__main__":
    key = jax.random.PRNGKey(0)
    k_x, k_p, k_x2, k_p2 = jax.random.split(key, 4)

    # ---- small demo config ---------------------------------------------------
    B, in_chan, mid_chan, n_classes, H, W = 2, 4, 8, 4, 16, 16
    x = jax.random.normal(k_x, (B, in_chan, H, W), jnp.float32)
    params = init_params(k_p, in_chan, mid_chan, n_classes)
    ref = jax.block_until_ready(reference_forward(x, params))

    # exact f32 path (multi-tile grid, per-tap matmuls)
    out_f32 = jax.block_until_ready(
        bisenet_output_forward(x, params, tile_h=8, compute_dtype=jnp.float32))
    assert out_f32.shape == (B, n_classes, H, W)
    assert bool(jnp.allclose(out_f32, ref, rtol=1e-4, atol=1e-4)), \
        "f32 Pallas output does not match JAX reference"

    # default bf16 fast path (whole-H tile) -- bf16-level tolerance expected
    out_bf16 = jax.block_until_ready(bisenet_output_forward(x, params))
    assert bool(jnp.allclose(out_bf16, ref, rtol=1e-1, atol=1e-1)), \
        "bf16 Pallas output does not match JAX reference"

    # ---- Cin % 32 == 0 config: exercises the K-stacked tap path -------------
    B2, Cin2, Cmid2, Ncls2, H2, W2 = 1, 128, 64, 19, 16, 16
    x2 = jax.random.normal(k_x2, (B2, Cin2, H2, W2), jnp.float32)
    params2 = init_params(k_p2, Cin2, Cmid2, Ncls2)
    ref2 = jax.block_until_ready(reference_forward(x2, params2))
    out2_f32 = jax.block_until_ready(
        bisenet_output_forward(x2, params2, compute_dtype=jnp.float32))
    assert bool(jnp.allclose(out2_f32, ref2, rtol=1e-4, atol=1e-4)), \
        "K-stacked f32 Pallas output does not match JAX reference"
    out2_bf16 = jax.block_until_ready(bisenet_output_forward(x2, params2))
    assert bool(jnp.allclose(out2_bf16, ref2, rtol=1e-1, atol=1e-1)), \
        "K-stacked bf16 Pallas output does not match JAX reference"

    print("KERNEL_OK")
</pallas_src>

<mosaic_0001>
module attributes {stable_mosaic.version = 11 : i64} {
  func.func @_bisenet_out_kernel(%arg0: i32, %arg1: i32, %arg2: memref<1x4x128xf32, #tpu.memory_space<vmem>>, %arg3: memref<1x1x4x16xf32, #tpu.memory_space<vmem>>, %arg4: memref<1x1x4x16xf32, #tpu.memory_space<vmem>>, %arg5: memref<3x8x12xf32, #tpu.memory_space<vmem>>, %arg6: memref<8x1xf32, #tpu.memory_space<vmem>>, %arg7: memref<4x8xf32, #tpu.memory_space<vmem>>, %arg8: memref<1x4x128xf32, #tpu.memory_space<vmem>>) attributes {dimension_semantics = [#tpu.dimension_semantics<parallel>, #tpu.dimension_semantics<parallel>], iteration_bounds = array<i64: 2, 2>, scalar_prefetch = 0 : i64, scratch_operands = 0 : i64, tpu.core_type = #tpu.core_type<tc>, window_params = [{transform_indices = @transform_0, window_bounds = array<i64: 1, 4, 128>}, {transform_indices = @transform_1, window_bounds = array<i64: 1, 1, 4, 16>}, {transform_indices = @transform_2, window_bounds = array<i64: 1, 1, 4, 16>}, {pipeline_mode = #tpu.pipeline_mode<synchronous>, transform_indices = @transform_3, window_bounds = array<i64: 3, 8, 12>}, {pipeline_mode = #tpu.pipeline_mode<synchronous>, transform_indices = @transform_4, window_bounds = array<i64: 8, 1>}, {pipeline_mode = #tpu.pipeline_mode<synchronous>, transform_indices = @transform_5, window_bounds = array<i64: 4, 8>}, {transform_indices = @transform_6, window_bounds = array<i64: 1, 4, 128>}]} {
    %cst = arith.constant 0.000000e+00 : f32
    %0 = vector.broadcast %cst : f32 to vector<4x16xf32>
    %c0_i32 = arith.constant 0 : i32
    %1 = arith.cmpi sgt, %arg1, %c0_i32 : i32
    %c0 = arith.constant 0 : index
    %c0_0 = arith.constant 0 : index
    %c0_1 = arith.constant 0 : index
    %c0_2 = arith.constant 0 : index
    %2 = vector.load %arg3[%c0, %c0_0, %c0_1, %c0_2] : memref<1x1x4x16xf32, #tpu.memory_space<vmem>>, vector<1x1x4x16xf32>
    %3 = vector.shape_cast %2 : vector<1x1x4x16xf32> to vector<4x16xf32>
    %4 = arith.select %1, %3, %0 : vector<4x16xf32>
    %c1_i32 = arith.constant 1 : i32
    %5 = arith.cmpi slt, %arg1, %c1_i32 : i32
    %c0_3 = arith.constant 0 : index
    %c0_4 = arith.constant 0 : index
    %c0_5 = arith.constant 0 : index
    %c0_6 = arith.constant 0 : index
    %6 = vector.load %arg4[%c0_3, %c0_4, %c0_5, %c0_6] : memref<1x1x4x16xf32, #tpu.memory_space<vmem>>, vector<1x1x4x16xf32>
    %7 = vector.shape_cast %6 : vector<1x1x4x16xf32> to vector<4x16xf32>
    %8 = arith.select %5, %7, %0 : vector<4x16xf32>
    %9 = tpu.iota {dimensions = array<i32: 1>} : vector<1x128xi32>
    %c16_i32 = arith.constant 16 : i32
    %c0_i32_7 = arith.constant 0 : i32
    %10 = arith.cmpi eq, %c16_i32, %c0_i32_7 : i32
    %c1_i32_8 = arith.constant 1 : i32
    %11 = arith.select %10, %c1_i32_8, %c16_i32 : i32
    %12 = vector.broadcast %11 : i32 to vector<1x128xi32>
    %13 = arith.remsi %9, %12 : vector<1x128xi32>
    %c0_i32_9 = arith.constant 0 : i32
    %14 = vector.broadcast %c0_i32_9 : i32 to vector<1x128xi32>
    %15 = arith.cmpi ne, %13, %14 : vector<1x128xi32>
    %c0_i32_10 = arith.constant 0 : i32
    %16 = vector.broadcast %c0_i32_10 : i32 to vector<1x128xi32>
    %17 = arith.cmpi slt, %13, %16 : vector<1x128xi32>
    %c0_i32_11 = arith.constant 0 : i32
    %18 = arith.cmpi slt, %11, %c0_i32_11 : i32
    %19 = vector.broadcast %18 : i1 to vector<1x128xi1>
    %20 = vector.broadcast %19 : vector<1x128xi1> to vector<1x128xi1>
    %21 = arith.xori %17, %20 : vector<1x128xi1>
    %22 = arith.andi %21, %15 : vector<1x128xi1>
    %23 = vector.broadcast %11 : i32 to vector<1x128xi32>
    %24 = arith.addi %13, %23 : vector<1x128xi32>
    %25 = arith.select %22, %24, %13 : vector<1x128xi1>, vector<1x128xi32>
    %c0_i32_12 = arith.constant 0 : i32
    %26 = vector.broadcast %c0_i32_12 : i32 to vector<1x128xi32>
    %27 = arith.cmpi ne, %25, %26 : vector<1x128xi32>
    %c15_i32 = arith.constant 15 : i32
    %28 = vector.broadcast %c15_i32 : i32 to vector<1x128xi32>
    %29 = arith.cmpi ne, %25, %28 : vector<1x128xi32>
    %cst_13 = arith.constant 0.000000e+00 : f32
    %30 = vector.broadcast %cst_13 : f32 to vector<8x128xf32>
    %c0_14 = arith.constant 0 : index
    %c0_15 = arith.constant 0 : index
    %c0_16 = arith.constant 0 : index
    %31 = vector.load %arg2[%c0_14, %c0_15, %c0_16] : memref<1x4x128xf32, #tpu.memory_space<vmem>>, vector<1x4x112xf32>
    %32 = vector.shape_cast %31 : vector<1x4x112xf32> to vector<4x112xf32>
    %33 = tpu.concatenate %4, %32 in 1 : vector<4x16xf32>, vector<4x112xf32> -> vector<4x128xf32>
    %c1_i32_17 = arith.constant 1 : i32
    %34 = tpu.dynamic_rotate %33 by %c1_i32_17 dim 1 : vector<4x128xf32>, i32 -> vector<4x128xf32>
    %cst_18 = arith.constant 0.000000e+00 : f32
    %35 = vector.shape_cast %27 : vector<1x128xi1> to vector<1x128xi1>
    %36 = vector.broadcast %35 : vector<1x128xi1> to vector<4x128xi1>
    %37 = vector.broadcast %cst_18 : f32 to vector<4x128xf32>
    %38 = arith.select %36, %34, %37 : vector<4x128xi1>, vector<4x128xf32>
    %c127_i32 = arith.constant 127 : i32
    %39 = tpu.dynamic_rotate %33 by %c127_i32 dim 1 : vector<4x128xf32>, i32 -> vector<4x128xf32>
    %cst_19 = arith.constant 0.000000e+00 : f32
    %40 = vector.shape_cast %29 : vector<1x128xi1> to vector<1x128xi1>
    %41 = vector.broadcast %40 : vector<1x128xi1> to vector<4x128xi1>
    %42 = vector.broadcast %cst_19 : f32 to vector<4x128xf32>
    %43 = arith.select %41, %39, %42 : vector<4x128xi1>, vector<4x128xf32>
    %c0_20 = arith.constant 0 : index
    %c0_21 = arith.constant 0 : index
    %c0_22 = arith.constant 0 : index
    %44 = vector.load %arg5[%c0_20, %c0_21, %c0_22] : memref<3x8x12xf32, #tpu.memory_space<vmem>>, vector<1x8x4xf32>
    %45 = vector.shape_cast %44 : vector<1x8x4xf32> to vector<8x4xf32>
    %c0_23 = arith.constant 0 : index
    %c0_24 = arith.constant 0 : index
    %c4 = arith.constant 4 : index
    %46 = vector.load %arg5[%c0_23, %c0_24, %c4] : memref<3x8x12xf32, #tpu.memory_space<vmem>>, vector<1x8x4xf32>
    %47 = vector.shape_cast %46 : vector<1x8x4xf32> to vector<8x4xf32>
    %c0_25 = arith.constant 0 : index
    %c0_26 = arith.constant 0 : index
    %c8 = arith.constant 8 : index
    %48 = vector.load %arg5[%c0_25, %c0_26, %c8] : memref<3x8x12xf32, #tpu.memory_space<vmem>>, vector<1x8x4xf32>
    %49 = vector.shape_cast %48 : vector<1x8x4xf32> to vector<8x4xf32>
    %cst_27 = arith.constant dense<0.000000e+00> : vector<8x128xf32>
    %50 = tpu.matmul %45, %38, %cst_27 {dimension_numbers = #tpu.dot_dimension_numbers<[1], [0], [0], [1], [0, 0, 1, 1], [], []>} : vector<8x4xf32>, vector<4x128xf32>, vector<8x128xf32> -> vector<8x128xf32>
    %51 = arith.addf %30, %50 : vector<8x128xf32>
    %cst_28 = arith.constant dense<0.000000e+00> : vector<8x128xf32>
    %52 = tpu.matmul %47, %33, %cst_28 {dimension_numbers = #tpu.dot_dimension_numbers<[1], [0], [0], [1], [0, 0, 1, 1], [], []>} : vector<8x4xf32>, vector<4x128xf32>, vector<8x128xf32> -> vector<8x128xf32>
    %53 = arith.addf %51, %52 : vector<8x128xf32>
    %cst_29 = arith.constant dense<0.000000e+00> : vector<8x128xf32>
    %54 = tpu.matmul %49, %43, %cst_29 {dimension_numbers = #tpu.dot_dimension_numbers<[1], [0], [0], [1], [0, 0, 1, 1], [], []>} : vector<8x4xf32>, vector<4x128xf32>, vector<8x128xf32> -> vector<8x128xf32>
    %55 = arith.addf %53, %54 : vector<8x128xf32>
    %c0_30 = arith.constant 0 : index
    %c0_31 = arith.constant 0 : index
    %c0_32 = arith.constant 0 : index
    %56 = vector.load %arg2[%c0_30, %c0_31, %c0_32] : memref<1x4x128xf32, #tpu.memory_space<vmem>>, vector<1x4x128xf32>
    %57 = vector.shape_cast %56 : vector<1x4x128xf32> to vector<4x128xf32>
    %c1_i32_33 = arith.constant 1 : i32
    %58 = tpu.dynamic_rotate %57 by %c1_i32_33 dim 1 : vector<4x128xf32>, i32 -> vector<4x128xf32>
    %cst_34 = arith.constant 0.000000e+00 : f32
    %59 = vector.shape_cast %27 : vector<1x128xi1> to vector<1x128xi1>
    %60 = vector.broadcast %59 : vector<1x128xi1> to vector<4x128xi1>
    %61 = vector.broadcast %cst_34 : f32 to vector<4x128xf32>
    %62 = arith.select %60, %58, %61 : vector<4x128xi1>, vector<4x128xf32>
    %c127_i32_35 = arith.constant 127 : i32
    %63 = tpu.dynamic_rotate %57 by %c127_i32_35 dim 1 : vector<4x128xf32>, i32 -> vector<4x128xf32>
    %cst_36 = arith.constant 0.000000e+00 : f32
    %64 = vector.shape_cast %29 : vector<1x128xi1> to vector<1x128xi1>
    %65 = vector.broadcast %64 : vector<1x128xi1> to vector<4x128xi1>
    %66 = vector.broadcast %cst_36 : f32 to vector<4x128xf32>
    %67 = arith.select %65, %63, %66 : vector<4x128xi1>, vector<4x128xf32>
    %c1 = arith.constant 1 : index
    %c0_37 = arith.constant 0 : index
    %c0_38 = arith.constant 0 : index
    %68 = vector.load %arg5[%c1, %c0_37, %c0_38] : memref<3x8x12xf32, #tpu.memory_space<vmem>>, vector<1x8x4xf32>
    %69 = vector.shape_cast %68 : vector<1x8x4xf32> to vector<8x4xf32>
    %c1_39 = arith.constant 1 : index
    %c0_40 = arith.constant 0 : index
    %c4_41 = arith.constant 4 : index
    %70 = vector.load %arg5[%c1_39, %c0_40, %c4_41] : memref<3x8x12xf32, #tpu.memory_space<vmem>>, vector<1x8x4xf32>
    %71 = vector.shape_cast %70 : vector<1x8x4xf32> to vector<8x4xf32>
    %c1_42 = arith.constant 1 : index
    %c0_43 = arith.constant 0 : index
    %c8_44 = arith.constant 8 : index
    %72 = vector.load %arg5[%c1_42, %c0_43, %c8_44] : memref<3x8x12xf32, #tpu.memory_space<vmem>>, vector<1x8x4xf32>
    %73 = vector.shape_cast %72 : vector<1x8x4xf32> to vector<8x4xf32>
    %cst_45 = arith.constant dense<0.000000e+00> : vector<8x128xf32>
    %74 = tpu.matmul %69, %62, %cst_45 {dimension_numbers = #tpu.dot_dimension_numbers<[1], [0], [0], [1], [0, 0, 1, 1], [], []>} : vector<8x4xf32>, vector<4x128xf32>, vector<8x128xf32> -> vector<8x128xf32>
    %75 = arith.addf %55, %74 : vector<8x128xf32>
    %cst_46 = arith.constant dense<0.000000e+00> : vector<8x128xf32>
    %76 = tpu.matmul %71, %57, %cst_46 {dimension_numbers = #tpu.dot_dimension_numbers<[1], [0], [0], [1], [0, 0, 1, 1], [], []>} : vector<8x4xf32>, vector<4x128xf32>, vector<8x128xf32> -> vector<8x128xf32>
    %77 = arith.addf %75, %76 : vector<8x128xf32>
    %cst_47 = arith.constant dense<0.000000e+00> : vector<8x128xf32>
    %78 = tpu.matmul %73, %67, %cst_47 {dimension_numbers = #tpu.dot_dimension_numbers<[1], [0], [0], [1], [0, 0, 1, 1], [], []>} : vector<8x4xf32>, vector<4x128xf32>, vector<8x128xf32> -> vector<8x128xf32>
    %79 = arith.addf %77, %78 : vector<8x128xf32>
    %c0_48 = arith.constant 0 : index
    %c0_49 = arith.constant 0 : index
    %c16 = arith.constant 16 : index
    %80 = vector.load %arg2[%c0_48, %c0_49, %c16] : memref<1x4x128xf32, #tpu.memory_space<vmem>>, vector<1x4x112xf32>
    %81 = vector.shape_cast %80 : vector<1x4x112xf32> to vector<4x112xf32>
    %82 = tpu.concatenate %81, %8 in 1 : vector<4x112xf32>, vector<4x16xf32> -> vector<4x128xf32>
    %c1_i32_50 = arith.constant 1 : i32
    %83 = tpu.dynamic_rotate %82 by %c1_i32_50 dim 1 : vector<4x128xf32>, i32 -> vector<4x128xf32>
    %cst_51 = arith.constant 0.000000e+00 : f32
    %84 = vector.shape_cast %27 : vector<1x128xi1> to vector<1x128xi1>
    %85 = vector.broadcast %84 : vector<1x128xi1> to vector<4x128xi1>
    %86 = vector.broadcast %cst_51 : f32 to vector<4x128xf32>
    %87 = arith.select %85, %83, %86 : vector<4x128xi1>, vector<4x128xf32>
    %c127_i32_52 = arith.constant 127 : i32
    %88 = tpu.dynamic_rotate %82 by %c127_i32_52 dim 1 : vector<4x128xf32>, i32 -> vector<4x128xf32>
    %cst_53 = arith.constant 0.000000e+00 : f32
    %89 = vector.shape_cast %29 : vector<1x128xi1> to vector<1x128xi1>
    %90 = vector.broadcast %89 : vector<1x128xi1> to vector<4x128xi1>
    %91 = vector.broadcast %cst_53 : f32 to vector<4x128xf32>
    %92 = arith.select %90, %88, %91 : vector<4x128xi1>, vector<4x128xf32>
    %c2 = arith.constant 2 : index
    %c0_54 = arith.constant 0 : index
    %c0_55 = arith.constant 0 : index
    %93 = vector.load %arg5[%c2, %c0_54, %c0_55] : memref<3x8x12xf32, #tpu.memory_space<vmem>>, vector<1x8x4xf32>
    %94 = vector.shape_cast %93 : vector<1x8x4xf32> to vector<8x4xf32>
    %c2_56 = arith.constant 2 : index
    %c0_57 = arith.constant 0 : index
    %c4_58 = arith.constant 4 : index
    %95 = vector.load %arg5[%c2_56, %c0_57, %c4_58] : memref<3x8x12xf32, #tpu.memory_space<vmem>>, vector<1x8x4xf32>
    %96 = vector.shape_cast %95 : vector<1x8x4xf32> to vector<8x4xf32>
    %c2_59 = arith.constant 2 : index
    %c0_60 = arith.constant 0 : index
    %c8_61 = arith.constant 8 : index
    %97 = vector.load %arg5[%c2_59, %c0_60, %c8_61] : memref<3x8x12xf32, #tpu.memory_space<vmem>>, vector<1x8x4xf32>
    %98 = vector.shape_cast %97 : vector<1x8x4xf32> to vector<8x4xf32>
    %cst_62 = arith.constant dense<0.000000e+00> : vector<8x128xf32>
    %99 = tpu.matmul %94, %87, %cst_62 {dimension_numbers = #tpu.dot_dimension_numbers<[1], [0], [0], [1], [0, 0, 1, 1], [], []>} : vector<8x4xf32>, vector<4x128xf32>, vector<8x128xf32> -> vector<8x128xf32>
    %100 = arith.addf %79, %99 : vector<8x128xf32>
    %cst_63 = arith.constant dense<0.000000e+00> : vector<8x128xf32>
    %101 = tpu.matmul %96, %82, %cst_63 {dimension_numbers = #tpu.dot_dimension_numbers<[1], [0], [0], [1], [0, 0, 1, 1], [], []>} : vector<8x4xf32>, vector<4x128xf32>, vector<8x128xf32> -> vector<8x128xf32>
    %102 = arith.addf %100, %101 : vector<8x128xf32>
    %cst_64 = arith.constant dense<0.000000e+00> : vector<8x128xf32>
    %103 = tpu.matmul %98, %92, %cst_64 {dimension_numbers = #tpu.dot_dimension_numbers<[1], [0], [0], [1], [0, 0, 1, 1], [], []>} : vector<8x4xf32>, vector<4x128xf32>, vector<8x128xf32> -> vector<8x128xf32>
    %104 = arith.addf %102, %103 : vector<8x128xf32>
    %c0_65 = arith.constant 0 : index
    %c0_66 = arith.constant 0 : index
    %105 = vector.load %arg6[%c0_65, %c0_66] : memref<8x1xf32, #tpu.memory_space<vmem>>, vector<8x1xf32>
    %106 = vector.broadcast %105 : vector<8x1xf32> to vector<8x128xf32>
    %107 = arith.addf %104, %106 : vector<8x128xf32>
    %cst_67 = arith.constant 0.000000e+00 : f32
    %108 = vector.broadcast %cst_67 : f32 to vector<8x128xf32>
    %109 = arith.maximumf %107, %108 : vector<8x128xf32>
    %c0_68 = arith.constant 0 : index
    %c0_69 = arith.constant 0 : index
    %110 = vector.load %arg7[%c0_68, %c0_69] : memref<4x8xf32, #tpu.memory_space<vmem>>, vector<4x8xf32>
    %cst_70 = arith.constant dense<0.000000e+00> : vector<4x128xf32>
    %111 = tpu.matmul %110, %109, %cst_70 {dimension_numbers = #tpu.dot_dimension_numbers<[1], [0], [0], [1], [0, 0, 1, 1], [], []>} : vector<4x8xf32>, vector<8x128xf32>, vector<4x128xf32> -> vector<4x128xf32>
    %c0_71 = arith.constant 0 : index
    %c0_72 = arith.constant 0 : index
    %c0_73 = arith.constant 0 : index
    %112 = vector.load %arg8[%c0_71, %c0_72, %c0_73] : memref<1x4x128xf32, #tpu.memory_space<vmem>>, vector<1x4x128xf32>
    %113 = vector.shape_cast %112 : vector<1x4x128xf32> to vector<4x128xf32>
    %114 = vector.shape_cast %111 : vector<4x128xf32> to vector<1x4x128xf32>
    tpu.vector_store %arg8[%c0_71, %c0_72, %c0_73], %114 {strides = array<i32>} : memref<1x4x128xf32, #tpu.memory_space<vmem>>, vector<1x4x128xf32>,
    return
  }
  func.func @transform_0(%arg0: i32, %arg1: i32) -> (i32, i32, i32) {
    %c0_i32 = arith.constant 0 : i32
    %c0_i32_0 = arith.constant 0 : i32
    return %arg0, %c0_i32, %arg1 : i32, i32, i32
  }
  func.func @transform_1(%arg0: i32, %arg1: i32) -> (i32, i32, i32, i32) {
    %c1_i32 = arith.constant 1 : i32
    %0 = arith.subi %arg1, %c1_i32 : i32
    %c0_i32 = arith.constant 0 : i32
    %1 = arith.maxsi %0, %c0_i32 : i32
    %c0_i32_0 = arith.constant 0 : i32
    %c0_i32_1 = arith.constant 0 : i32
    %c0_i32_2 = arith.constant 0 : i32
    return %arg0, %1, %c0_i32_0, %c0_i32_1 : i32, i32, i32, i32
  }
  func.func @transform_2(%arg0: i32, %arg1: i32) -> (i32, i32, i32, i32) {
    %c1_i32 = arith.constant 1 : i32
    %0 = arith.addi %arg1, %c1_i32 : i32
    %c1_i32_0 = arith.constant 1 : i32
    %1 = arith.minsi %0, %c1_i32_0 : i32
    %c0_i32 = arith.constant 0 : i32
    %c0_i32_1 = arith.constant 0 : i32
    %c0_i32_2 = arith.constant 0 : i32
    return %arg0, %1, %c0_i32, %c0_i32_1 : i32, i32, i32, i32
  }
  func.func @transform_3(%arg0: i32, %arg1: i32) -> (i32, i32, i32) {
    %c0_i32 = arith.constant 0 : i32
    %c0_i32_0 = arith.constant 0 : i32
    %c0_i32_1 = arith.constant 0 : i32
    %c0_i32_2 = arith.constant 0 : i32
    return %c0_i32, %c0_i32_0, %c0_i32_1 : i32, i32, i32
  }
  func.func @transform_4(%arg0: i32, %arg1: i32) -> (i32, i32) {
    %c0_i32 = arith.constant 0 : i32
    %c0_i32_0 = arith.constant 0 : i32
    %c0_i32_1 = arith.constant 0 : i32
    return %c0_i32, %c0_i32_0 : i32, i32
  }
  func.func @transform_5(%arg0: i32, %arg1: i32) -> (i32, i32) {
    %c0_i32 = arith.constant 0 : i32
    %c0_i32_0 = arith.constant 0 : i32
    %c0_i32_1 = arith.constant 0 : i32
    return %c0_i32, %c0_i32_0 : i32, i32
  }
  func.func @transform_6(%arg0: i32, %arg1: i32) -> (i32, i32, i32) {
    %c0_i32 = arith.constant 0 : i32
    %c0_i32_0 = arith.constant 0 : i32
    return %arg0, %c0_i32, %arg1 : i32, i32, i32
  }
}

</mosaic_0001>

<bundles_post_ra>
// kernel: tpu_custom_call.1
= control target key start
LH: loop header
LB: loop body
LE: loop exit
PB: predicated region body
PF: predicated region fallthrough
CT: control target
= control target key end

     0   :  { %s2467_s0 = inlined_call_operand.hbm [shape: f32[2,4,256], index: 0, kind: input, shape index: {}]   ;;  %s2468_s1 = inlined_call_operand.hbm [shape: f32[2,2,4,16], index: 1, kind: input, shape index: {}]   ;;  %s2469_s2 = inlined_call_operand.hbm [shape: f32[2,2,4,16], index: 2, kind: input, shape index: {}]   ;;  %s2470_s3 = inlined_call_operand.hbm [shape: f32[3,8,12], index: 3, kind: input, shape index: {}]   ;;  %s2471_s4 = inlined_call_operand.vmem [shape: f32[8,1], index: 4, kind: input, shape index: {}]   ;;  %s2472_s5 = inlined_call_operand.vmem [shape: f32[4,8], index: 5, kind: input, shape index: {}]   ;;  %s2473_s6 = inlined_call_operand.hbm [shape: f32[2,4,256], index: 6, kind: output, shape index: {}]  }
   0x1   :  { %2491 = sst [smem:[#allocation25_spill]] %s2468_s1 }
   0x2   :  { %2492 = sst [smem:[#allocation26_spill]] %s2470_s3 }
   0x3   :  { %2493 = sst [smem:[#allocation27_spill]] %s2471_s4 }
   0x4   :  { %2494 = sst [smem:[#allocation28_spill]] %s2472_s5 }
   0x5   :  { %2495 = sst [smem:[#allocation29_spill]] %s2473_s6 }
   0x6   :  { %11 = vsyncpa [#allocation3], 0 }
   0x7   :  { %13 = vsyncpa [#allocation3 + $0x1], 0 }
   0x8   :  { %14 = vsyncpa [#allocation6], 0 }
   0x9   :  { %16 = vsyncpa [#allocation6 + $0x1], 0 }
   0xa   :  { %17 = vsyncpa [#allocation9], 0 }
   0xb   :  { %18 = vsyncpa [#allocation4], 0 }
   0xc   :  { %20 = vsyncpa [#allocation4 + $0x1], 0  ;;  %s2014_s21 = smov 0   ;;  %s2016_s22 = smov 0  }
   0xd   :  { %s2018_s23 = smov 0   ;;  %s2020_s24 = smov 0  }
   0xe   :  { %s2022_s25 = smov 0   ;;  %s2024_s26 = smov 0  }
   0xf   :  { %s2026_s27 = smov 0   ;;  %s2028_s28 = smov 0  }
  0x10   :  { %s2030_s29 = smov 0   ;;  %s2032_s30 = smov 0  }
  0x11   :  { %s2034_s7 = smov 0   ;;  %s2036_s8 = smov 0  }
  0x12   :  { %s2038_s9 = smov 0   ;;  %s2040_s10 = smov 0  }
  0x13 LB: > { %2496 = sst [smem:[#allocation16_spill]] %s1925_s25  ;;  %s2083_s11 = sadd.s32 4294967295, %s1961_s10   ;;  %s1961_s10 = sphi %s2040_s10, %s26_s10   ;;  %s1957_s9 = sphi %s2038_s9, %s2564_s9   ;;  %s1953_s8 = sphi %s2036_s8, %s2563_s8   ;;  %s1949_s7 = sphi %s2034_s7, %s2562_s7   ;;  %s1945_s30 = sphi %s2032_s30, %s2561_s30   ;;  %s1941_s29 = sphi %s2030_s29, %s2551_s29   ;;  %s1937_s28 = sphi %s2028_s28, %s2560_s28   ;;  %s1933_s27 = sphi %s2026_s27, %s2559_s27   ;;  %s1929_s26 = sphi %s2024_s26, %s2558_s26   ;;  %s1925_s25 = sphi %s2022_s25, %s2557_s25   ;;  %s1921_s24 = sphi %s2020_s24, %s2548_s24   ;;  %s1917_s23 = sphi %s2018_s23, %s2556_s23   ;;  %s1913_s22 = sphi %s2016_s22, %s2555_s22   ;;  %s1909_s21 = sphi %s2014_s21, %s2554_s21  }
  0x14   : > { %2497 = sst [smem:[#allocation17_spill]] %s1941_s29  ;;  %s35_s12 = sadd.s32 1, %s1953_s8 }
  0x15   : > { %2498 = sst [smem:[#allocation18_spill]] %s1945_s30  ;;  %p36_p0 = scmp.ge.s32.totalorder %s35_s12, 2 }
  0x16   : > { %2499 = sst [smem:[#allocation19_spill]] %s1949_s7  ;;  %s38_s13 = sadd.s32 1, %s1957_s9 }
  0x17   : > { %p2483_p1 = scmp.eq.s32.totalorder %s1961_s10, 0  ;;  %p2484_p2 = scmp.eq.s32.totalorder %s2083_s11, 0 }
  0x18   : > { %s2566_s12 = smov (%p36_p0, %s35_s12), 0  ;;  %s2568_s13 = smov (!%p36_p0, %s38_s13), %s1957_s9 }
  0x19   : > { %2500 = sst [smem:[#allocation20_spill]] %s2566_s12  ;;  %s43_s14 = ssub.s32 %s1953_s8, %s2566_s12 }
  0x1a   : > { %p40_p3 = scmp.ge.s32.totalorder %s2568_s13, 2  ;;  %s81_s15 = sadd.s32 1, %s1929_s26 }
  0x1b   : > { %p88_p4 = scmp.ne.s32.totalorder %s1929_s26, %s1925_s25  ;;  %p94_p6 = scmp.ne.s32.totalorder %s1925_s25, %s1921_s24 }
  0x1c   : > { %s2570_s13 = smov (%p40_p3, %s2568_s13), 0  ;;  %p2482_p10 = scmp.lt.s32.totalorder %s1961_s10, 4 }
  0x1d   : > { %2501 = sst [smem:[#allocation21_spill]] %s2570_s13  ;;  %s2099_s16 = ssub.s32 %s1957_s9, %s2570_s13 }
  0x1e   : > { %s2102_s17 = sor.u32 %s43_s14, %s2099_s16  ;;  %p2110_p7 = por %p88_p4, %p2483_p1 }
  0x1f   : > { %p2116_p8 = por %p94_p6, %p2484_p2  ;;  %p2481_p9 = scmp.eq.s32.totalorder %s2099_s16, 0 }
  0x20   : > { %s282_s14 = sand.u32 1, %s1961_s10   ;;  %s284_s12 = sand.u32 1, %s1929_s26  }
  0x21   : > { %s2503_s19 = scalar_select %p2116_p8, 1, 0 }
  0x22   : > { %s2127_s13 = scalar_select %p2481_p9, %s1929_s26, %s81_s15  }
  0x23   : > { %2504 = sst [smem:[#allocation22_spill]] %s2503_s19  ;;  %s1424_s24 = sshll.u32 %s284_s12, 2 }
  0x24   : > { %2505 = sst [smem:[#allocation23_spill]] %s2127_s13  ;;  %s2486_s6 = sshll.u32 %s1957_s9, 7 }
  0x25   : > { %s2506_s1 = sld [smem:[#allocation25_spill]]  ;;  %s286_s30 = scalar_lea.vmem [#allocation5], %s1424_s24 }
  0x26   : > { %s298_s25 = sshll.u32 %s286_s30, 4  ;;  %p2140_p11 = pnand %p2482_p10, %p2110_p7  ;;  %s299_s25 = int_to_ptr.vmem [resolvable:$true] %s298_s25 }
  0x27   : > { %s2144_s15 = scalar_lea.sflag [#allocation6], %s282_s14 }
  0x28   : > { %p1693_p13 = pneg %p2140_p11 }
  0x2b   : > { %s296_s4 = scalar_lea.hbm %s2506_s1, %s2486_s6 }
  0x2c   : > { %s1691_s20 = scalar_lea.hbm %s296_s4, 64  ;;  %p1697_p4 = scmp.lt.s32.totalorder %s296_s4, %s2506_s1 }
  0x2d   : > { %p1692_p12 = scmp.ne.s32.totalorder %s296_s4, %s1691_s20 }
  0x2f   : > { %p1694_p0 = pnand %p1693_p13, %p1692_p12 }
  0x31   : > { %p1695_p3 = pneg %p1694_p0 }
  0x33   : > { %p1700_p6 = pnand %p1697_p4, %p1695_p3 }
  0x35   : > { %1703 = shalt.err (!%p1700_p6)
}
  0x36   : > { %s1704_s30 = scalar_lea.vmem %s299_s25, 64  ;;  %s1963_s12 = smov [#allocation5]  }
  0x37   : > { %p1705_p7 = scmp.ne.s32.totalorder %s299_s25, %s1704_s30  ;;  %s1709_s18 = sshll.u32 %s1963_s12, 4  ;;  %s1710_s18 = int_to_ptr.vmem [resolvable:$false] %s1709_s18 }
  0x38   : > { %s1711_s14 = scalar_lea.vmem %s1710_s18, 128  ;;  %p1712_p1 = scmp.lt.s32.totalorder %s299_s25, %s1710_s18 }
  0x39   : > { %p1707_p9 = pnand %p1705_p7, %p1693_p13  ;;  %p1713_p5 = scmp.lt.s32.totalorder %s1711_s14, %s1704_s30 }
  0x3b   : > { %p1708_p10 = pneg %p1707_p9  ;;  %p1714_p2 = por %p1713_p5, %p1712_p1 }
  0x3d   : > { %p1715_p8 = pnand %p1714_p2, %p1708_p10 }
  0x3f   : > { %1718 = shalt.err (!%p1715_p8)
}
  0x40   : > { %1553 = dma.hbm_to_vmem [thread:$0]  (!%p2140_p11), %s296_s4, 64, %s299_s25, %s2144_s15  }
  0x41   : > { %p1418_p12 = scmp.ge.s32.totalorder %s1961_s10, 1  ;;  %p230_p9 = scmp.lt.s32.totalorder %s1961_s10, 5 }
  0x42   : > { %s1964_s20 = smov [#allocation8]   ;;  %p2509_p2 = scmp.eq.s32.totalorder %s2083_s11, 0 }
  0x43   : > { %s242_s24 = sshll.u32 %s1964_s20, 4  ;;  %p2156_p13 = pnand %p1418_p12, %p230_p9  ;;  %s243_s24 = int_to_ptr.vmem [resolvable:$true] %s242_s24 }
  0x44   : > { %s1415_s7 = sadd.s32 4294967294, %s1961_s10   ;;  %s47_s4 = sadd.s32 1, %s1941_s29 }
  0x45   : > { %p1543_p1 = pneg %p2156_p13  ;;  %s1730_s25 = scalar_lea.vmem %s243_s24, 384 }
  0x46   : > { %p1731_p10 = scmp.ne.s32.totalorder %s243_s24, %s1730_s25  ;;  %p1738_p3 = scmp.lt.s32.totalorder %s243_s24, %s243_s24 }
  0x47   : > { %p2164_p5 = pnand %p1543_p1, %p2509_p2  ;;  %p1739_p4 = scmp.lt.s32.totalorder %s1730_s25, %s1730_s25 }
  0x49   : > { %p1721_p8 = pneg %p2164_p5  ;;  %p1740_p6 = por %p1739_p4, %p1738_p3 }
  0x4b   : > { %p1733_p11 = pnand %p1731_p10, %p1721_p8 }
  0x4d   : > { %p1734_p0 = pneg %p1733_p11 }
  0x4f   : > { %p1741_p7 = pnand %p1740_p6, %p1734_p0 }
  0x51   : > { %1744 = shalt.err (!%p1741_p7)
}
  0x52   : > { %s1965_s30 = smov 128   ;;  %s1966_s12 = smov 8  }
  0x53   : > { %s2511_s3 = sld [smem:[#allocation26_spill]]  ;;  %p2512_p12 = scmp.eq.s32.totalorder %s2102_s17, 0 }
  0x54   : > { %p54_p9 = scmp.ne.s32.totalorder %s1941_s29, %s1937_s28  ;;  %p60_p1 = scmp.ne.s32.totalorder %s1937_s28, %s1933_s27 }
  0x55   : > { %s2180_s20 = scalar_select %p2512_p12, %s1941_s29, %s47_s4  }
  0x56   : > { %p217_p2 = scmp.eq.s32.totalorder %s2083_s11, 3  ;;  %p223_p8 = scmp.eq.s32.totalorder %s1415_s7, 3 }
  0x57   : > { %2513 = sst [smem:[#allocation24_spill]] %s2180_s20  ;;  %p2514_p10 = scmp.eq.s32.totalorder %s1961_s10, 0 }
  0x58   : > { %p2515_p0 = scmp.eq.s32.totalorder %s2083_s11, 0  ;;  %p2195_p4 = por %p217_p2, %p54_p9 }
  0x59   : > { %1546 = dma.hbm_to_vmem [thread:$0]  (!%p2164_p5), %s2511_s3, 384, %s243_s24, [#allocation9], %s1965_s30, %s1965_s30, %s1966_s12  }
  0x5a   : > { %p56_p11 = por %p2514_p10, %p54_p9  ;;  %p2191_p3 = por %p2515_p0, %p60_p1 }
  0x5b   : > { %s2517_s19 = scalar_select %p2195_p4, 1, 0 }
  0x5c   : > { %s2516_s25 = scalar_select %p2191_p3, 1, 0 }
  0x5d   : > { %p2199_p5 = por %p223_p8, %p60_p1  ;;  %s262_s24 = sand.u32 1, %s1941_s29  }
  0x5e   : > { %s2519_s4 = sshll.u32 %s1957_s9, 1  ;;  %s1421_s12 = sshll.u32 %s262_s24, 2 }
  0x5f   : > { %s2518_s17 = scalar_select %p2199_p5, 1, 0 }
  0x60   : > { %s271_s30 = sadd.s32 %s1953_s8, %s2519_s4  ;;  %s266_s1 = scalar_lea.vmem [#allocation2], %s1421_s12 }
  0x61   : > { %s1423_s7 = sshll.u32 %s271_s30, 6  ;;  %s275_s3 = sshll.u32 %s266_s1, 4  ;;  %s276_s3 = int_to_ptr.vmem [resolvable:$true] %s275_s3 }
  0x62   : > { %s273_s6 = scalar_lea.hbm %s2467_s0, %s1423_s7  ;;  %p2520_p6 = scmp.lt.s32.totalorder %s1961_s10, 4 }
  0x63   : > { %s263_s13 = scalar_lea.sflag [#allocation3], %s262_s24  ;;  %s1758_s29 = scalar_lea.vmem %s276_s3, 64 }
  0x64   : > { %p2212_p7 = pnand %p2520_p6, %p56_p11  ;;  %p1759_p9 = scmp.ne.s32.totalorder %s276_s3, %s1758_s29 }
  0x65   : > { %s1967_s4 = smov [#allocation2]  }
  0x66   : > { %p1747_p12 = pneg %p2212_p7  ;;  %s1763_s30 = sshll.u32 %s1967_s4, 4  ;;  %s1764_s30 = int_to_ptr.vmem [resolvable:$false] %s1763_s30 }
  0x67   : > { %s1765_s7 = scalar_lea.vmem %s1764_s30, 128  ;;  %p1766_p8 = scmp.lt.s32.totalorder %s276_s3, %s1764_s30 }
  0x68   : > { %p1761_p1 = pnand %p1759_p9, %p1747_p12  ;;  %p1767_p10 = scmp.lt.s32.totalorder %s1765_s7, %s1758_s29 }
  0x6a   : > { %p1762_p2 = pneg %p1761_p1  ;;  %p1768_p0 = por %p1767_p10, %p1766_p8 }
  0x6c   : > { %p1769_p5 = pnand %p1768_p0, %p1762_p2 }
  0x6e   : > { %1772 = shalt.err (!%p1769_p5)
}
  0x6f   : > { %1550 = dma.hbm_to_vmem [thread:$0]  (!%p2212_p7), %s273_s6, 64, %s276_s3, %s263_s13  }
  0x70   : > { %s115_s1 = sadd.s32 1, %s1917_s23  ;;  %p122_p11 = scmp.ne.s32.totalorder %s1917_s23, %s1913_s22 }
  0x71   : > { %p128_p6 = scmp.ne.s32.totalorder %s1913_s22, %s1909_s21  ;;  %s307_s29 = sand.u32 1, %s1917_s23  }
  0x72   : > { %p2522_p5 = scmp.eq.s32.totalorder %s1961_s10, 0  ;;  %p2523_p9 = scmp.eq.s32.totalorder %s2083_s11, 0 }
  0x73   : > { %s1428_s24 = sshll.u32 %s307_s29, 2  ;;  %s2525_s12 = sshll.u32 %s1957_s9, 7 }
  0x74   : > { %p124_p12 = por %p122_p11, %p2522_p5  ;;  %p2230_p1 = por %p128_p6, %p2523_p9 }
  0x75   : > { %s1905_s18 = sadd.s32 64, %s2525_s12  ;;  %s309_s14 = scalar_lea.vmem [#allocation7], %s1428_s24 }
  0x76   : > { %s2524_s20 = scalar_select %p2230_p1, 1, 0 }
  0x77   : > { %s321_s4 = sshll.u32 %s309_s14, 4  ;;  %p2526_p2 = scmp.eq.s32.totalorder %s2099_s16, 0  ;;  %s322_s4 = int_to_ptr.vmem [resolvable:$true] %s321_s4 }
  0x78   : > { %s319_s21 = scalar_lea.hbm %s2469_s2, %s1905_s18  ;;  %p2527_p7 = scmp.lt.s32.totalorder %s1961_s10, 4 }
  0x79   : > { %s2239_s30 = scalar_select %p2526_p2, %s1917_s23, %s115_s1  }
  0x7a   : > { %p2246_p8 = pnand %p2527_p7, %p124_p12  ;;  %s1773_s7 = scalar_lea.hbm %s319_s21, 64 }
  0x7b   : > { %p1774_p10 = scmp.ne.s32.totalorder %s319_s21, %s1773_s7  ;;  %s1778_s29 = scalar_lea.hbm %s2469_s2, 256 }
  0x7c   : > { %p1775_p0 = pneg %p2246_p8  ;;  %p1780_p5 = scmp.lt.s32.totalorder %s1778_s29, %s1773_s7 }
  0x7e   : > { %p1776_p11 = pnand %p1775_p0, %p1774_p10 }
  0x80   : > { %p1777_p6 = pneg %p1776_p11 }
  0x82   : > { %p1782_p9 = pnand %p1780_p5, %p1777_p6 }
  0x84   : > { %1785 = shalt.err (!%p1782_p9)
}
  0x85   : > { %s1786_s24 = scalar_lea.vmem %s322_s4, 64  ;;  %s1968_s12 = smov [#allocation7]  }
  0x86   : > { %p1787_p2 = scmp.ne.s32.totalorder %s322_s4, %s1786_s24  ;;  %s1791_s18 = sshll.u32 %s1968_s12, 4  ;;  %s1792_s18 = int_to_ptr.vmem [resolvable:$false] %s1791_s18 }
  0x87   : > { %s1793_s14 = scalar_lea.vmem %s1792_s18, 128  ;;  %p1794_p4 = scmp.lt.s32.totalorder %s322_s4, %s1792_s18 }
  0x88   : > { %p1789_p12 = pnand %p1787_p2, %p1775_p0  ;;  %p1795_p1 = scmp.lt.s32.totalorder %s1793_s14, %s1786_s24 }
  0x8a   : > { %p1790_p7 = pneg %p1789_p12  ;;  %p1796_p3 = por %p1795_p1, %p1794_p4 }
  0x8c   : > { %p1797_p10 = pnand %p1796_p3, %p1790_p7 }
  0x8e   : > { %1800 = shalt.err (!%p1797_p10)
}
  0x8f   : > { %1556 = dma.hbm_to_vmem [thread:$0]  (!%p2246_p8), %s319_s21, 64, %s322_s4, %s2144_s15  }
  0x90   : > { %330 = sbr.rel (%p2156_p13) target bundleno = 825 (0x339), region = 44  ;;  %s2261_s3 = sand.u32 (!%p2156_p13), 1, %s1937_s28  }
  0x91   : > { %s1432_s6 = sshll.u32 (!%p2156_p13), %s2261_s3, 2  ;;  %s333_s7 = scalar_lea.sflag (!%p2156_p13), [#allocation3], %s2261_s3 }
  0x92   : > { %s336_s16 = scalar_lea.vmem (!%p2156_p13), [#allocation2], %s1432_s6  ;;  %p2529_p3 = scmp.ne.s32.totalorder (!%p2156_p13), %s2516_s25, 0 }
  0x95   : > { %1884 = dma.done.wait (%p2529_p3), %s333_s7, 64  }
  0x96   : > { %1886 = vsyncadd (%p2529_p3), %s333_s7, 4294967232  ;;  %s2530_s15 = sld [smem:[#allocation16_spill]]  ;;  %s341_s4 = sand.u32 1, %s2083_s11  }
  0x97   : > { %s2531_s5 = sld [smem:[#allocation22_spill]]  ;;  %s342_s1 = scalar_lea.sflag [#allocation6], %s341_s4 }
  0x9c   : > { %s343_s21 = sand.u32 1, %s2530_s15  }
  0x9d   : > { %s2273_s13 = sshll.u32 %s343_s21, 2  ;;  %p2532_p13 = scmp.ne.s32.totalorder %s2531_s5, 0 }
  0x9e   : > { %s345_s29 = scalar_lea.vmem [#allocation5], %s2273_s13 }
  0x9f   : > { %1888 = dma.done.wait (%p2532_p13), %s342_s1, 64  }
  0xa0   : > { %1890 = vsyncadd (%p2532_p13), %s342_s1, 4294967232  ;;  %s352_s24 = sand.u32 1, %s1913_s22   ;;  %p2533_p4 = scmp.ne.s32.totalorder %s2524_s20, 0 }
  0xa1   : > { %s1434_s25 = sshll.u32 %s352_s24, 2 }
  0xa2   : > { %s354_s12 = scalar_lea.vmem [#allocation7], %s1434_s25 }
  0xa3   : > { %1892 = dma.done.wait (%p2533_p4), %s342_s1, 64  }
  0xa4   : > { %1894 = vsyncadd (%p2533_p4), %s342_s1, 4294967232  ;;  %p2534_p1 = scmp.eq.s32.totalorder %s2083_s11, 0 }
  0xa6   : > { %1896 = dma.done.wait (%p2534_p1), [#allocation9], 384   ;;  %p2535_p8 = pmov %p2534_p1 }
  0xa7   : > { %s2536_s18 = sld [smem:[#allocation18_spill]]  ;;  %v1969_v0 = vmov 0.0   ;;  %v2292_v2 = vld [vmem:[%s336_s16] sm:$0xf]  ;;  %v410_v3 = vld [vmem:[%s354_s12] sm:$0xf]  ;;  %v415_v19 = vlaneseq }
  0xa8   : > { %1898 = vsyncadd (%p2535_p8), [#allocation9], 4294966912  ;;  %1481 = vmatprep.subr.mxu0 %v1969_v0  ;;  %1486 = vmatprep.subr.mxu1 %v1969_v0  ;;  %s1970_s20 = smov 16   ;;  %s1971_s7 = smov 112   ;;  %v448_v5 = vld [vmem:[#allocation8] sm:$0xff]  ;;  %vm1973_vm1 = vmmov 0  }
  0xa9   : > { %433 = vrot.lane.b32.xlu0 %v2292_v2, %s1970_s20  ;;  %s1972_s11 = smov 1   ;;  %1483 = vmatprep.mubr.msk.f32.mxu0 %vm1973_vm1, %v1969_v0  ;;  %s1974_s16 = smov 124   ;;  %v689_v6 = vld [vmem:[#allocation8 + $0x8] sm:$0xff]  ;;  %v404_v8 = vld [vmem:[%s345_s29] sm:$0xf]  ;;  %vm436_vm3 = vcmask 130048  }
  0xaa   : > { %1488 = vmatprep.mubr.msk.f32.mxu1 %vm1973_vm1, %v1969_v0  ;;  %s1975_s15 = smov 120   ;;  %s1976_s5 = smov 127   ;;  %vm455_vm4 = vcmask 1043456   ;;  %vm929_vm5 = vcmask 916480   ;;  %vm452_vm6 = vcmask 31744   ;;  %v1977_v16 = vmov 0  }
  0xab   : > { %1689 = vset.pattern.permute.xlu1 %v1977_v16  ;;  %1690 = vset.pattern.permute.xlu0 %v1977_v16  ;;  %v938_v17 = vld [vmem:[#allocation8 + $0x10] sm:$0xff]  ;;  %s2537_s1 = sld [smem:[#allocation27_spill]]  ;;  %v416_v20 = vand.u32 127, %v415_v19  ;;  %vm1181_vm9 = vcmask 64512   ;;  %s1257_s13 = scalar_lea.sflag [#allocation4], %s2261_s3 }
  0xac   : > { %s2542_s29 = sld [smem:[#allocation19_spill]]  ;;  %p2545_p5 = scmp.ne.s32.totalorder %s2517_s19, 0 }
  0xad   : > { %p409_p0 = scmp.lt.s32.totalorder %s2536_s18, 1  ;;  %922 = vrot.lane.b32.xlu0 %v2292_v2, %s1971_s7  ;;  %p403_p11 = scmp.gt.s32.totalorder %s2536_s18, 0  ;;  %v421_v23 = vand.u32 15, %v416_v20 }
  0xae   : > { %s2543_s12 = sld [smem:[#allocation28_spill]] }
  0xaf   : > { %s411_s14 = scalar_select %p409_p0, 1, 0  ;;  %vm2322_vm7 = vcmp.ne.s32.totalorder %v421_v23, 0  ;;  %vm2329_vm8 = vcmp.ne.s32.totalorder %v421_v23, 15 }
  0xb0   : > { %s405_s4 = scalar_select %p403_p11, 1, 0 }
  0xb1   : > { %v412_v1 = vstv %s411_s14  ;;  %450 = vrot.lane.b32.xlu0 %v448_v5, %s1974_s16  ;;  %v1172_v18 = vld [vmem:[%s2537_s1] sm:$0xff] }
  0xb2   : > { %vm413_vm0 = vcmp.eq.s32.totalorder %v412_v1, 1  ;;  %v406_v7 = vstv %s405_s4  ;;  %s1457_s14 = sshll.u32 %s2542_s29, 1  ;;  %s2544_s4 = sld [smem:[#allocation29_spill]] }
  0xb3   : > { %v414_v4 = vsel %vm413_vm0, %v410_v3, 0.0  ;;  %vm407_vm2 = vcmp.eq.s32.totalorder %v406_v7, 1  ;;  %s1268_s20 = sadd.s32 %s2536_s18, %s1457_s14 }
  0xb4   : > { %926 = vrot.lane.b32.xlu1 %v414_v4, %s1971_s7  ;;  %v408_v9 = vsel %vm407_vm2, %v404_v8, 0.0  ;;  %s396_s7 = scalar_lea.vmem [#allocation10], %s1432_s6  ;;  %s1978_s6 = smov [#allocation10]  }
  0xb5   : > { %604 = vrot.lane.b32.xlu0 %v448_v5, %s1975_s15  ;;  %s1805_s18 = sshll.u32 %s1978_s6, 4  ;;  %s1806_s18 = int_to_ptr.vmem [resolvable:$false] %s1805_s18 }
  0xb6   : > { %s1807_s29 = scalar_lea.vmem %s1806_s18, 128 }
  0xb8   : > { %682 = vrot.lane.b32.xlu1 %v2292_v2, %s1972_s11 }
  0xb9   : > { %685 = vrot.lane.b32.xlu0 %v2292_v2, %s1976_s5 }
  0xbd   : > { %844 = vrot.lane.b32.xlu0 %v689_v6, %s1975_s15 }
 0x11b   : > { %v434_v10 = vpop.permute.xlu0 %433 }
 0x11c   : > { %v437_v11 = vsel %vm436_vm3, %v408_v9, %v434_v10 }
 0x11d   : > { %438 = vrot.lane.b32.xlu1 %v437_v11, %s1972_s11  ;;  %1482 = vmatpush3.msk.msra.mxu0 %vm455_vm4, %v437_v11 }
 0x11e   : > { %1491 = vmatprep.subr.mxu0 %v1969_v0 }
 0x11f   : > { %v923_v13 = vpop.permute.xlu0 %922 }
 0x121   : > { %443 = vrot.lane.b32.xlu1 %v437_v11, %s1976_s5 }
 0x123   : > { %v451_v15 = vpop.permute.xlu0 %450 }
 0x124   : > { %1484 = vmatmul.mubr.msk.f32.vlgmr.msra.gmra.mxu0 %vm452_vm6, %v451_v15 }
 0x125   : > { %767 = vrot.lane.b32.xlu1 %v689_v6, %s1974_s16  ;;  %1493 = vmatprep.mubr.msk.f32.mxu0 %vm1973_vm1, %v1969_v0 }
 0x126   : > { %v927_v12 = vpop.permute.xlu1 %926 }
 0x127   : > { %v930_v14 = vsel %vm929_vm5, %v923_v13, %v927_v12  ;;  %v605_v22 = vpop.permute.xlu0 %604 }
 0x128   : > { %934 = vrot.lane.b32.xlu0 %v930_v14, %s1976_s5 }
 0x129   : > { %931 = vrot.lane.b32.xlu1 %v930_v14, %s1972_s11  ;;  %s1272_s11 = sshll.u32 %s396_s7, 4  ;;  %s2387_s11 = int_to_ptr.vmem [resolvable:$true] %s1272_s11 }
 0x12a   : > { %v683_v21 = vpop.permute.xlu1 %682  ;;  %s1801_s1 = scalar_lea.vmem %s2387_s11, 64  ;;  %p1808_p12 = scmp.lt.s32.totalorder %s2387_s11, %s1806_s18 }
 0x12b   : > { %v686_v26 = vpop.permute.xlu0 %685  ;;  %v684_v29 = vsel %vm2322_vm7, %v683_v21, 0.0  ;;  %p1802_p6 = scmp.ne.s32.totalorder %s2387_s11, %s1801_s1  ;;  %p1809_p7 = scmp.lt.s32.totalorder %s1807_s29, %s1801_s1 }
 0x12c   : > { %1094 = vrot.lane.b32.xlu0 %v938_v17, %s1975_s15  ;;  %v687_v31 = vsel %vm2329_vm8, %v686_v26, 0.0 }
 0x12d   : > { %1016 = vrot.lane.b32.xlu1 %v938_v17, %s1974_s16  ;;  %s1458_s16 = sshll.u32 %s1268_s20, 6  ;;  %p1803_p9 = pnand %p1802_p6, %p2545_p5 }
 0x12e   : > { %s2392_s21 = scalar_lea.hbm %s2544_s4, %s1458_s16  ;;  %p1810_p10 = por %p1809_p7, %p1808_p12 }
 0x12f   : > { %v845_v33 = vpop.permute.xlu0 %844  ;;  %p1804_p2 = pneg %p1803_p9 }
 0x131   : > { %1175 = vperm.xlu1 %1689, %v1172_v18   ;;  %p1811_p3 = pnand %p1810_p10, %p1804_p2 }
 0x18f   : > { %v439_v25 = vpop.permute.xlu1 %438 }
 0x190   : > { %v442_v27 = vsel %vm2322_vm7, %v439_v25, 0.0 }
 0x191   : > { %1487 = vmatpush3.msk.msra.mxu1 %vm455_vm4, %v442_v27 }
 0x192   : > { %1489 = vmatmul.mubr.msk.f32.vlgmr.msra.gmra.mxu1 %vm452_vm6, %v448_v5  ;;  %1496 = vmatprep.subr.mxu1 %v1969_v0 }
 0x193   : > { %1497 = vmatpush3.msk.msra.mxu1 %vm455_vm4, %v684_v29  ;;  %v444_v30 = vpop.permute.xlu1 %443  ;;  %1498 = vmatprep.mubr.msk.f32.mxu1 %vm1973_vm1, %v1969_v0 }
 0x194   : > { %v447_v32 = vsel %vm2329_vm8, %v444_v30, 0.0  ;;  %1506 = vmatprep.subr.mxu1 %v1969_v0 }
 0x195   : > { %1492 = vmatpush3.msk.msra.mxu0 %vm455_vm4, %v447_v32 }
 0x196   : > { %1494 = vmatmul.mubr.msk.f32.vlgmr.msra.gmra.mxu0 %vm452_vm6, %v605_v22  ;;  %1499 = vmatmul.mubr.msk.f32.vlgmr.msra.gmra.mxu1 %vm452_vm6, %v689_v6  ;;  %v1180_v6 = vld [vmem:[%s2543_s12] sm:$0xf] }
 0x197   : > { %1507 = vmatpush3.msk.msra.mxu1 %vm455_vm4, %v687_v31  ;;  %v768_v34 = vpop.permute.xlu1 %767  ;;  %1501 = vmatprep.subr.mxu0 %v1969_v0 }
 0x198   : > { %1502 = vmatpush3.msk.msra.mxu0 %vm455_vm4, %v2292_v2  ;;  %1503 = vmatprep.mubr.msk.f32.mxu0 %vm1973_vm1, %v1969_v0 }
 0x199   : > { %1508 = vmatprep.mubr.msk.f32.mxu1 %vm1973_vm1, %v1969_v0  ;;  %1516 = vmatprep.subr.mxu1 %v1969_v0 }
 0x19a   : > { %1504 = vmatmul.mubr.msk.f32.vlgmr.msra.gmra.mxu0 %vm452_vm6, %v768_v34  ;;  %1509 = vmatmul.mubr.msk.f32.vlgmr.msra.gmra.mxu1 %vm452_vm6, %v845_v33  ;;  %v935_v35 = vpop.permute.xlu0 %934 }
 0x19b   : > { %1517 = vmatpush3.msk.msra.mxu1 %vm455_vm4, %v930_v14  ;;  %v932_v36 = vpop.permute.xlu1 %931  ;;  %1511 = vmatprep.subr.mxu0 %v1969_v0  ;;  %v936_v38 = vsel %vm2329_vm8, %v935_v35, 0.0 }
 0x19c   : > { %v933_v37 = vsel %vm2322_vm7, %v932_v36, 0.0  ;;  %1513 = vmatprep.mubr.msk.f32.mxu0 %vm1973_vm1, %v1969_v0  ;;  %1518 = vmatprep.mubr.msk.f32.mxu1 %vm1973_vm1, %v1969_v0 }
 0x19d   : > { %1512 = vmatpush3.msk.msra.mxu0 %vm455_vm4, %v933_v37  ;;  %1526 = vmatprep.subr.mxu1 %v1969_v0 }
 0x19e   : > { %1514 = vmatmul.mubr.msk.f32.vlgmr.msra.gmra.mxu0 %vm452_vm6, %v938_v17  ;;  %1521 = vmatprep.subr.mxu0 %v1969_v0  ;;  %v1095_v40 = vpop.permute.xlu0 %1094 }
 0x19f   : > { %v1017_v39 = vpop.permute.xlu1 %1016  ;;  %1522 = vmatpush3.msk.msra.mxu0 %vm455_vm4, %v936_v38  ;;  %1523 = vmatprep.mubr.msk.f32.mxu0 %vm1973_vm1, %v1969_v0 }
 0x1a0   : > { %1519 = vmatmul.mubr.msk.f32.vlgmr.msra.gmra.mxu1 %vm452_vm6, %v1017_v39 }
 0x1a1   : > { %1528 = vmatprep.mubr.msk.f32.mxu1 %vm1973_vm1, %v1969_v0 }
 0x1a2   : > { %1524 = vmatmul.mubr.msk.f32.vlgmr.msra.gmra.mxu0 %vm452_vm6, %v1095_v40 }
 0x1ac   : > { %v1176_v63 = vpop.permute.xlu1 %1175 }
 0x1e4   : > { %v525_v41 = vpop.f32.mrf.mxu0 }
 0x1e6   : > { %v1485_v42 = vpop.f32.mrf.mxu0 }
 0x252   : > { %v600_v43 = vpop.f32.mrf.mxu1 }
 0x253   : > { %v601_v45 = vadd.f32 %v600_v43, %v525_v41 }
 0x254   : > { %v1490_v44 = vpop.f32.mrf.mxu1 }
 0x256   : > { %v677_v46 = vpop.f32.mrf.mxu0  ;;  %v762_v47 = vpop.f32.mrf.mxu1 }
 0x257   : > { %v681_v48 = vadd.f32 %v677_v46, %v601_v45 }
 0x258   : > { %v1495_v49 = vpop.f32.mrf.mxu0  ;;  %v1500_v50 = vpop.f32.mrf.mxu1 }
 0x259   : > { %v766_v51 = vadd.f32 %v762_v47, %v681_v48 }
 0x25a   : > { %v839_v52 = vpop.f32.mrf.mxu0  ;;  %v917_v53 = vpop.f32.mrf.mxu1 }
 0x25b   : > { %v843_v54 = vadd.f32 %v839_v52, %v766_v51 }
 0x25c   : > { %v1505_v55 = vpop.f32.mrf.mxu0  ;;  %v1510_v56 = vpop.f32.mrf.mxu1 }
 0x25d   : > { %v921_v57 = vadd.f32 %v917_v53, %v843_v54 }
 0x25e   : > { %v1011_v58 = vpop.f32.mrf.mxu0 }
 0x25f   : > { %v1015_v59 = vadd.f32 %v1011_v58, %v921_v57 }
 0x260   : > { %v1515_v60 = vpop.f32.mrf.mxu0  ;;  %v1089_v61 = vpop.f32.mrf.mxu1 }
 0x261   : > { %v1093_v62 = vadd.f32 %v1089_v61, %v1015_v59 }
 0x262   : > { %v1520_v0 = vpop.f32.mrf.mxu1  ;;  %v1167_v1 = vpop.f32.mrf.mxu0 }
 0x263   : > { %v1171_v2 = vadd.f32 %v1167_v1, %v1093_v62 }
 0x264   : > { %v1525_v3 = vpop.f32.mrf.mxu0 }
 0x265   : > { %v1178_v4 = vadd.f32 %v1176_v63, %v1171_v2 }
 0x267   : > { %v1179_v5 = vmax.f32 %v1178_v4, 0.0 }
 0x269   : > { %1527 = vmatpush3.msra.mxu1 %v1179_v5 }
 0x26a   : > { %1529 = vmatmul.mubr.msk.f32.vlgmr.msra.gmra.mxu1 %vm1181_vm9, %v1180_v6 }
 0x32a   : > { %v1251_v7 = vpop.f32.mrf.mxu1 }
 0x32b   : > { %1255 = vst [vmem:[%s396_s7] sm:$0xf] %v1251_v7 }
 0x32c   : > { %v1530_v8 = vpop.f32.mrf.mxu1 }
 0x32d   : > { %1814 = shalt.err (!%p1811_p3)
}
 0x32e   : > { %s1815_s24 = scalar_lea.hbm %s2392_s21, 64  ;;  %s1819_s12 = scalar_lea.hbm %s2544_s4, 256 }
 0x32f   : > { %p1816_p13 = scmp.ne.s32.totalorder %s2392_s21, %s1815_s24  ;;  %p1820_p8 = scmp.lt.s32.totalorder %s2392_s21, %s2544_s4 }
 0x330   : > { %p1821_p0 = scmp.lt.s32.totalorder %s1819_s12, %s1815_s24 }
 0x331   : > { %p1817_p4 = pnand %p1816_p13, %p2545_p5 }
 0x332   : > { %p1822_p11 = por %p1821_p0, %p1820_p8 }
 0x333   : > { %p1818_p1 = pneg %p1817_p4 }
 0x335   : > { %p1823_p6 = pnand %p1822_p11, %p1818_p1 }
 0x337   : > { %1826 = shalt.err (!%p1823_p6)
}
 0x338   : > { %1541 = dma.vmem_to_hbm [thread:$0]  (%p2545_p5), %s2387_s11, 64, %s2392_s21, %s1257_s13  }
 0x339 PF: > { %p1564_p9 = scmp.ge.s32.totalorder %s1961_s10, 2  ;;  %s1284_s7 = sand.u32 1, %s1933_s27  }
 0x33a   : > { %p2546_p2 = scmp.ne.s32.totalorder %s2518_s17, 0  ;;  %s1285_s16 = scalar_lea.sflag [#allocation4], %s1284_s7 }
 0x33c   : > { %p1558_p12 = pnand %p1564_p9, %p2546_p2 }
 0x33e   : > { %p1559_p7 = pneg %p1558_p12 }
 0x340   : > { %1900 = dma.done.wait (%p1559_p7), %s1285_s16, 64  }
 0x341   : > { %1902 = vsyncadd (%p1559_p7), %s1285_s16, 4294967232  ;;  %s26_s10 = sadd.s32 1, %s1961_s10   ;;  %s2548_s24 = sld [smem:[#allocation16_spill]] }
 0x342   : > { %p2420_p10 = scmp.ge.s32.totalorder %s26_s10, 6   ;;  %s2549_s19 = sld [smem:[#allocation23_spill]] }
 0x343   : > { %s2550_s11 = sld [smem:[#allocation17_spill]]  ;;  %s2554_s21 = smov %s1913_s22 }
 0x344   : > { %s2551_s29 = sld [smem:[#allocation24_spill]]  ;;  %s2555_s22 = smov %s1917_s23 }
 0x345   : > { %s2552_s17 = sld [smem:[#allocation20_spill]]  ;;  %s2556_s23 = smov %s2239_s30 }
 0x346   : > { %s2553_s5 = sld [smem:[#allocation21_spill]]  ;;  %s2557_s25 = smov %s1929_s26 }
 0x347   : > { %s2559_s27 = smov %s1937_s28  ;;  %s2561_s30 = smov %s1953_s8 }
 0x348   : > { %s2558_s26 = smov %s2549_s19  ;;  %s2562_s7 = smov %s1957_s9 }
 0x349   : > { %s2560_s28 = smov %s2550_s11  ;;  %25 = sbr.rel (!%p2420_p10) target bundleno = 19 (0x13), region = 119 }
 0x34b   : > { %s2563_s8 = smov %s2552_s17 }
 0x34c   : > { %s2564_s9 = smov %s2553_s5 }
 0x34e   :  { %1290 = vsyncpa [#allocation3], 1 }
 0x34f   :  { %1292 = vsyncpa [#allocation3 + $0x1], 1 }
 0x350   :  { %1293 = vsyncpa [#allocation6], 1 }
 0x351   :  { %1295 = vsyncpa [#allocation6 + $0x1], 1 }
 0x352   :  { %1296 = vsyncpa [#allocation9], 1 }
 0x353   :  { %1297 = vsyncpa [#allocation4], 1 }
 0x354   :  { %1299 = vsyncpa [#allocation4 + $0x1], 1 }

</bundles_post_ra>
